<compile_context>
chip_gen: v5e
topology: v5e:2x2
jax: 0.10.0
libtpu: 0.0.40
codegen_flags: <defaults>
</compile_context>

<pallas_src>
import functools

import jax
import jax.numpy as jnp
from jax.experimental import pallas as pl
from jax.experimental.pallas import tpu as pltpu

_LANE = 128          # TPU lane width — pad feature dims to multiples of this.
_DEFAULT_BATCH_TILE = 256   # MXU-aligned batch tile for the gridded path.


def _round_up(n, m):
    return ((n + m - 1) // m) * m


def _fused_mlp_kernel(*refs, num_layers):
    """refs = (x_ref, W0_ref, b0_ref, ..., W{L-1}_ref, b{L-1}_ref, o_ref).

    Unrolled full-MLP chain: dot + bias (+ ReLU on all but the last layer),
    matching DQN_model.forward.  Everything stays in vregs/VMEM; only the
    final lane-dense (TM, OUT_P) tile is stored.
    """
    x_ref = refs[0]
    o_ref = refs[-1]
    param_refs = refs[1:-1]

    x = x_ref[...]
    for i in range(num_layers):
        w = param_refs[2 * i][...]          # (IN_i, OUT_i_padded)
        b = param_refs[2 * i + 1][...]      # (1, OUT_i_padded) — sublane bcast
        x = jnp.dot(x, w, preferred_element_type=jnp.float32) + b
        if i < num_layers - 1:
            x = jnp.maximum(x, 0.0)
    o_ref[...] = x                          # already f32 — no cast needed


def init_dqn_params(key, input_size, output_size, nodes_per_layer_count):
    """nn.Linear-style U(-1/sqrt(fan_in), 1/sqrt(fan_in)) init.

    Returns a list of (W, b) with W stored as (in, out) — transpose of
    PyTorch's (out, in) — and b as (out,).  These are the *logical* params;
    call pad_params_for_tpu() once before the Pallas forward.
    """
    sizes = [input_size] + list(nodes_per_layer_count) + [output_size]
    params = []
    for i in range(len(sizes) - 1):
        fan_in, fan_out = sizes[i], sizes[i + 1]
        key, kw, kb = jax.random.split(key, 3)
        bound = 1.0 / jnp.sqrt(jnp.float32(fan_in))
        W = jax.random.uniform(kw, (fan_in, fan_out), jnp.float32,
                               minval=-bound, maxval=bound)
        b = jax.random.uniform(kb, (fan_out,), jnp.float32,
                               minval=-bound, maxval=bound)
        params.append((W, b))
    return params


def pad_params_for_tpu(params):
    """Zero-pad each layer's output width (and the next layer's matching input
    rows) to a multiple of 128 lanes.  Exact: padded columns get zero weight
    and zero bias, so their (pre-)activations are exactly 0 and contribute
    nothing downstream.  Done ONCE, outside the jitted forward."""
    padded = []
    prev_out_pad = 0
    for W, b in params:
        fan_in, fan_out = W.shape
        out_p = _round_up(fan_out, _LANE)
        Wp = jnp.zeros((fan_in + prev_out_pad, out_p), jnp.float32)
        Wp = Wp.at[:fan_in, :fan_out].set(W)
        bp = jnp.zeros((1, out_p), jnp.float32).at[0, :fan_out].set(b)
        padded.append((Wp, bp))
        prev_out_pad = out_p - fan_out
    return padded


def dqn_forward_fused(padded_params, state, output_size, *,
                      batch_tile=_DEFAULT_BATCH_TILE):
    """Fused forward pass.

    padded_params: output of pad_params_for_tpu().
    state:         (B, input_size) f32.
    output_size:   logical number of actions (static).
    Returns (B, output_size) f32.
    """
    num_layers = len(padded_params)
    B, IN = state.shape
    OUT_P = padded_params[-1][0].shape[1]   # lane-padded output width

    flat_params = []
    for W, b in padded_params:
        flat_params.append(W)
        flat_params.append(b)

    flops = 2 * B * sum(int(W.shape[0]) * int(W.shape[1])
                        for W, _ in padded_params)
    bytes_accessed = 4 * (
        int(state.size)
        + sum(int(W.size) + int(b.size) for W, b in padded_params)
        + B * OUT_P
    )
    cost = pl.CostEstimate(flops=flops, transcendentals=0,
                           bytes_accessed=bytes_accessed)
    kernel = functools.partial(_fused_mlp_kernel, num_layers=num_layers)

    if B <= batch_tile:
        # Small batch: single gridless invocation, everything whole-array in
        # VMEM.  No degenerate pipeline / per-step overhead.
        vmem = pl.BlockSpec(memory_space=pltpu.MemorySpace.VMEM)
        out_padded = pl.pallas_call(
            kernel,
            out_shape=jax.ShapeDtypeStruct((B, OUT_P), jnp.float32),
            in_specs=[vmem] * (1 + 2 * num_layers),
            out_specs=vmem,
            cost_estimate=cost,
        )(state, *flat_params)
    else:
        # Large replay/eval batch: tile the batch (MXU-aligned TM), mark it
        # "parallel" (v7x megacore shards tiles across both TensorCores).
        # Weights/biases use constant block indices so they stay VMEM-resident
        # across grid steps (DMA'd once).
        tm = batch_tile
        in_specs = [pl.BlockSpec((tm, IN), lambda i: (i, 0))]
        for W, b in padded_params:
            in_specs.append(pl.BlockSpec(W.shape, lambda i: (0, 0)))
            in_specs.append(pl.BlockSpec(b.shape, lambda i: (0, 0)))
        out_padded = pl.pallas_call(
            kernel,
            out_shape=jax.ShapeDtypeStruct((B, OUT_P), jnp.float32),
            grid=(pl.cdiv(B, tm),),
            in_specs=in_specs,
            out_specs=pl.BlockSpec((tm, OUT_P), lambda i: (i, 0)),
            cost_estimate=cost,
            compiler_params=pltpu.CompilerParams(
                dimension_semantics=("parallel",)),
        )(state, *flat_params)

    # Cheap slice back to the logical action count (drops the zero lanes).
    return out_padded[:, :output_size]


# Jitted entry point.  (In a real RL loop, jit the WHOLE step — action select,
# target eval, loss — so this tiny call is scheduled among surrounding work.)
dqn_forward = jax.jit(dqn_forward_fused, static_argnums=(2,),
                      static_argnames=("batch_tile",))


def dqn_forward_ref(params, state):
    """Plain-JAX reference (unpadded params) for correctness checks."""
    x = state
    n = len(params)
    for i, (W, b) in enumerate(params):
        x = x @ W + b
        if i < n - 1:
            x = jnp.maximum(x, 0.0)
    return x


if __name__ == "__main__":
    key = jax.random.PRNGKey(0)

    # DQN over 16-dim states, 4 actions, two hidden layers of 32 units.
    input_size = 16
    output_size = 4
    nodes_per_layer_count = [32, 32]

    key, k_params, k_s1, k_s2 = jax.random.split(key, 4)
    params = init_dqn_params(k_params, input_size, output_size,
                             nodes_per_layer_count)
    padded_params = pad_params_for_tpu(params)

    # --- small batch: gridless fused call -------------------------------
    batch_small = 8
    state_small = jax.random.normal(k_s1, (batch_small, input_size), jnp.float32)
    out_small = jax.block_until_ready(
        dqn_forward(padded_params, state_small, output_size))
    ref_small = dqn_forward_ref(params, state_small)
    assert out_small.shape == (batch_small, output_size)
    assert jnp.allclose(out_small, ref_small, atol=1e-5, rtol=1e-5)

    # --- larger replay batch: batch-gridded ("parallel") path ------------
    batch_big = 512
    state_big = jax.random.normal(k_s2, (batch_big, input_size), jnp.float32)
    out_big = jax.block_until_ready(
        dqn_forward(padded_params, state_big, output_size))
    ref_big = dqn_forward_ref(params, state_big)
    assert out_big.shape == (batch_big, output_size)
    assert jnp.allclose(out_big, ref_big, atol=1e-5, rtol=1e-5)

    print("KERNEL_OK")
</pallas_src>

<mosaic_0001>
module attributes {stable_mosaic.version = 11 : i64} {
  func.func @_fused_mlp_kernel(%arg0: memref<8x16xf32, #tpu.memory_space<vmem>>, %arg1: memref<16x128xf32, #tpu.memory_space<vmem>>, %arg2: memref<1x128xf32, #tpu.memory_space<vmem>>, %arg3: memref<128x128xf32, #tpu.memory_space<vmem>>, %arg4: memref<1x128xf32, #tpu.memory_space<vmem>>, %arg5: memref<128x128xf32, #tpu.memory_space<vmem>>, %arg6: memref<1x128xf32, #tpu.memory_space<vmem>>, %arg7: memref<8x128xf32, #tpu.memory_space<vmem>>) attributes {dimension_semantics = [], scalar_prefetch = 0 : i64, scratch_operands = 0 : i64, tpu.core_type = #tpu.core_type<tc>} {
    %c0 = arith.constant 0 : index
    %c0_0 = arith.constant 0 : index
    %0 = vector.load %arg0[%c0, %c0_0] : memref<8x16xf32, #tpu.memory_space<vmem>>, vector<8x16xf32>
    %c0_1 = arith.constant 0 : index
    %c0_2 = arith.constant 0 : index
    %1 = vector.load %arg1[%c0_1, %c0_2] : memref<16x128xf32, #tpu.memory_space<vmem>>, vector<16x128xf32>
    %c0_3 = arith.constant 0 : index
    %c0_4 = arith.constant 0 : index
    %2 = vector.load %arg2[%c0_3, %c0_4] : memref<1x128xf32, #tpu.memory_space<vmem>>, vector<1x128xf32>
    %cst = arith.constant dense<0.000000e+00> : vector<8x128xf32>
    %3 = tpu.matmul %0, %1, %cst {dimension_numbers = #tpu.dot_dimension_numbers<[1], [0], [0], [1], [0, 0, 1, 1], [], []>} : vector<8x16xf32>, vector<16x128xf32>, vector<8x128xf32> -> vector<8x128xf32>
    %4 = vector.broadcast %2 : vector<1x128xf32> to vector<8x128xf32>
    %5 = arith.addf %3, %4 : vector<8x128xf32>
    %cst_5 = arith.constant 0.000000e+00 : f32
    %6 = vector.broadcast %cst_5 : f32 to vector<8x128xf32>
    %7 = arith.maximumf %5, %6 : vector<8x128xf32>
    %c0_6 = arith.constant 0 : index
    %c0_7 = arith.constant 0 : index
    %8 = vector.load %arg3[%c0_6, %c0_7] : memref<128x128xf32, #tpu.memory_space<vmem>>, vector<128x128xf32>
    %c0_8 = arith.constant 0 : index
    %c0_9 = arith.constant 0 : index
    %9 = vector.load %arg4[%c0_8, %c0_9] : memref<1x128xf32, #tpu.memory_space<vmem>>, vector<1x128xf32>
    %cst_10 = arith.constant dense<0.000000e+00> : vector<8x128xf32>
    %10 = tpu.matmul %7, %8, %cst_10 {dimension_numbers = #tpu.dot_dimension_numbers<[1], [0], [0], [1], [0, 0, 1, 1], [], []>} : vector<8x128xf32>, vector<128x128xf32>, vector<8x128xf32> -> vector<8x128xf32>
    %11 = vector.broadcast %9 : vector<1x128xf32> to vector<8x128xf32>
    %12 = arith.addf %10, %11 : vector<8x128xf32>
    %cst_11 = arith.constant 0.000000e+00 : f32
    %13 = vector.broadcast %cst_11 : f32 to vector<8x128xf32>
    %14 = arith.maximumf %12, %13 : vector<8x128xf32>
    %c0_12 = arith.constant 0 : index
    %c0_13 = arith.constant 0 : index
    %15 = vector.load %arg5[%c0_12, %c0_13] : memref<128x128xf32, #tpu.memory_space<vmem>>, vector<128x128xf32>
    %c0_14 = arith.constant 0 : index
    %c0_15 = arith.constant 0 : index
    %16 = vector.load %arg6[%c0_14, %c0_15] : memref<1x128xf32, #tpu.memory_space<vmem>>, vector<1x128xf32>
    %cst_16 = arith.constant dense<0.000000e+00> : vector<8x128xf32>
    %17 = tpu.matmul %14, %15, %cst_16 {dimension_numbers = #tpu.dot_dimension_numbers<[1], [0], [0], [1], [0, 0, 1, 1], [], []>} : vector<8x128xf32>, vector<128x128xf32>, vector<8x128xf32> -> vector<8x128xf32>
    %18 = vector.broadcast %16 : vector<1x128xf32> to vector<8x128xf32>
    %19 = arith.addf %17, %18 : vector<8x128xf32>
    %c0_17 = arith.constant 0 : index
    %c0_18 = arith.constant 0 : index
    %20 = vector.load %arg7[%c0_17, %c0_18] : memref<8x128xf32, #tpu.memory_space<vmem>>, vector<8x128xf32>
    tpu.vector_store %arg7[%c0_17, %c0_18], %19 {strides = array<i32>} : memref<8x128xf32, #tpu.memory_space<vmem>>, vector<8x128xf32>,
    return
  }
}

</mosaic_0001>

<bundles_post_ra>
// kernel: dqn_forward_fused.1
= control target key start
LH: loop header
LB: loop body
LE: loop exit
PB: predicated region body
PF: predicated region fallthrough
CT: control target
= control target key end

     0   :  { %12 = vsyncpa [#allocation3], 0  ;;  %s429_s0 = inlined_call_operand.hbm [shape: f32[8,16], index: 0, kind: input, shape index: {}]   ;;  %s430_s1 = inlined_call_operand.hbm [shape: f32[16,128], index: 1, kind: input, shape index: {}]   ;;  %s431_s2 = inlined_call_operand.hbm [shape: f32[1,128], index: 2, kind: input, shape index: {}]   ;;  %s432_s3 = inlined_call_operand.hbm [shape: f32[128,128], index: 3, kind: input, shape index: {}]   ;;  %s433_s4 = inlined_call_operand.vmem [shape: f32[1,128], index: 4, kind: input, shape index: {}]   ;;  %s434_s5 = inlined_call_operand.hbm [shape: f32[128,128], index: 5, kind: input, shape index: {}]   ;;  %s435_s6 = inlined_call_operand.vmem [shape: f32[1,128], index: 6, kind: input, shape index: {}]   ;;  %s436_s7 = inlined_call_operand.vmem [shape: f32[8,128], index: 7, kind: output, shape index: {}]  }
   0x1   :  { %13 = vsyncpa [#allocation5], 0  ;;  %s30_s26 = sshll.u32 %s430_s1, 4  ;;  %s31_s26 = int_to_ptr.hbm [resolvable:$true] %s30_s26 }
   0x2   :  { %14 = vsyncpa [#allocation8], 0  ;;  %s358_s27 = smov [#allocation4]   ;;  %s54_s8 = sshll.u32 %s432_s3, 4  ;;  %s55_s8 = int_to_ptr.hbm [resolvable:$true] %s54_s8 }
   0x3   :  { %s32_s28 = sshll.u32 %s358_s27, 4  ;;  %s359_s9 = smov 128   ;;  %s33_s28 = int_to_ptr.vmem [resolvable:$true] %s32_s28 }
   0x4   :  { %s360_s10 = smov 8   ;;  %s361_s11 = smov [#allocation7]  }
   0x5   :  { %38 = dma.hbm_to_vmem [thread:$0]  %s31_s26, 256, %s33_s28, [#allocation5], %s359_s9, %s359_s9, %s360_s10  }
   0x6   :  { %s56_s12 = sshll.u32 %s361_s11, 4  ;;  %s20_s15 = sshll.u32 %s429_s0, 4  ;;  %s57_s12 = int_to_ptr.vmem [resolvable:$true] %s56_s12  ;;  %s21_s15 = int_to_ptr.hbm [resolvable:$true] %s20_s15 }
   0x7   :  { %62 = dma.hbm_to_vmem [thread:$0]  %s55_s8, 2048, %s57_s12, [#allocation8], %s359_s9, %s359_s9, %s360_s10  }
   0x8   :  { %s44_s17 = sshll.u32 %s431_s2, 4  ;;  %s362_s18 = smov [#allocation2]   ;;  %s45_s17 = int_to_ptr.hbm [resolvable:$true] %s44_s17 }
   0x9   :  { %s22_s19 = sshll.u32 %s362_s18, 4  ;;  %s363_s3 = smov [#allocation6]   ;;  %s23_s19 = int_to_ptr.vmem [resolvable:$true] %s22_s19 }
   0xa   :  { %25 = dma.hbm_to_vmem [thread:$0]  %s21_s15, 128, %s23_s19, [#allocation3]  }
   0xb   :  { %s46_s20 = sshll.u32 %s363_s3, 4  ;;  %s69_s23 = sshll.u32 %s434_s5, 4  ;;  %s47_s20 = int_to_ptr.vmem [resolvable:$true] %s46_s20  ;;  %s70_s23 = int_to_ptr.hbm [resolvable:$true] %s69_s23 }
   0xc   :  { %49 = dma.hbm_to_vmem [thread:$0]  %s45_s17, 16, %s47_s20, [#allocation5]  }
   0xd   :  { %s364_s0 = smov [#allocation9]  }
   0xe   :  { %s71_s24 = sshll.u32 %s364_s0, 4  ;;  %s72_s24 = int_to_ptr.vmem [resolvable:$true] %s71_s24 }
   0xf   :  { %77 = dma.hbm_to_vmem [thread:$0]  %s70_s23, 2048, %s72_s24, [#allocation8], %s359_s9, %s359_s9, %s360_s10  }
  0x10   :  { %352 = dma.done.wait [#allocation3], 128  }
  0x11   :  { %353 = vsyncadd [#allocation3], 4294967168 }
  0x12   :  { %354 = dma.done.wait [#allocation5], 272  }
  0x13   :  { %355 = vsyncadd [#allocation5], 4294967024 }
  0x14   :  { %356 = dma.done.wait [#allocation8], 4096  }
  0x15   :  { %357 = vsyncadd [#allocation8], 4294963200  ;;  %v102_v0 = vld [vmem:[#allocation4 + $0x8] sm:$0xff]  ;;  %v101_v1 = vld [vmem:[#allocation4] sm:$0xff]  ;;  %vm107_vm0 = vcmask 130048  }
  0x16   :  { %125 = vmatpush.msra.mxu0 %v102_v0  ;;  %v100_v2 = vld [vmem:[#allocation2] sm:$0xff]  ;;  %v147_v3 = vld [vmem:[#allocation7 + $0x78] sm:$0xff]  ;;  %v146_v4 = vld [vmem:[#allocation7 + $0x70] sm:$0xff] }
  0x17   :  { %152 = vmatpush.msra.mxu1 %v147_v3  ;;  %v145_v5 = vld [vmem:[#allocation7 + $0x68] sm:$0xff]  ;;  %v144_v6 = vld [vmem:[#allocation7 + $0x60] sm:$0xff]  ;;  %v143_v7 = vld [vmem:[#allocation7 + $0x58] sm:$0xff] }
  0x18   :  { %126 = vmatpush.msra.mxu0 %v101_v1  ;;  %v142_v8 = vld [vmem:[#allocation7 + $0x50] sm:$0xff]  ;;  %v141_v9 = vld [vmem:[#allocation7 + $0x48] sm:$0xff]  ;;  %v140_v10 = vld [vmem:[#allocation7 + $0x40] sm:$0xff] }
  0x19   :  { %221 = vmatmul.msk.f32.vlgmr.msra.gmra.mxu0 %vm107_vm0, %v100_v2  ;;  %153 = vmatpush.msra.mxu1 %v146_v4  ;;  %v139_v11 = vld [vmem:[#allocation7 + $0x38] sm:$0xff]  ;;  %v138_v12 = vld [vmem:[#allocation7 + $0x30] sm:$0xff]  ;;  %v137_v13 = vld [vmem:[#allocation7 + $0x28] sm:$0xff] }
  0x1a   :  { %v136_v14 = vld [vmem:[#allocation7 + $0x20] sm:$0xff]  ;;  %v135_v15 = vld [vmem:[#allocation7 + $0x18] sm:$0xff]  ;;  %v134_v16 = vld [vmem:[#allocation7 + $0x10] sm:$0xff] }
  0x1b   :  { %154 = vmatpush.msra.mxu1 %v145_v5  ;;  %v133_v17 = vld [vmem:[#allocation7 + $0x8] sm:$0xff]  ;;  %v132_v18 = vld [vmem:[#allocation7] sm:$0xff]  ;;  %v188_v19 = vld [vmem:[#allocation9 + $0x78] sm:$0xff] }
  0x1c   :  { %v187_v20 = vld [vmem:[#allocation9 + $0x70] sm:$0xff]  ;;  %193 = vmatpush.msra.mxu2 %v188_v19  ;;  %v186_v21 = vld [vmem:[#allocation9 + $0x68] sm:$0xff]  ;;  %v185_v22 = vld [vmem:[#allocation9 + $0x60] sm:$0xff] }
  0x1d   :  { %155 = vmatpush.msra.mxu1 %v144_v6  ;;  %v184_v23 = vld [vmem:[#allocation9 + $0x58] sm:$0xff]  ;;  %v183_v24 = vld [vmem:[#allocation9 + $0x50] sm:$0xff]  ;;  %v182_v25 = vld [vmem:[#allocation9 + $0x48] sm:$0xff] }
  0x1e   :  { %194 = vmatpush.msra.mxu2 %v187_v20  ;;  %v181_v26 = vld [vmem:[#allocation9 + $0x40] sm:$0xff]  ;;  %v180_v27 = vld [vmem:[#allocation9 + $0x38] sm:$0xff]  ;;  %v179_v28 = vld [vmem:[#allocation9 + $0x30] sm:$0xff] }
  0x1f   :  { %156 = vmatpush.msra.mxu1 %v143_v7  ;;  %v178_v29 = vld [vmem:[#allocation9 + $0x28] sm:$0xff]  ;;  %v177_v30 = vld [vmem:[#allocation9 + $0x20] sm:$0xff]  ;;  %v176_v31 = vld [vmem:[#allocation9 + $0x18] sm:$0xff] }
  0x20   :  { %195 = vmatpush.msra.mxu2 %v186_v21  ;;  %v229_v32 = vld [vmem:[#allocation6] ss:$0 sm:$0xff]  ;;  %v175_v36 = vld [vmem:[#allocation9 + $0x10] sm:$0xff]  ;;  %v174_v37 = vld [vmem:[#allocation9 + $0x8] sm:$0xff] }
  0x21   :  { %157 = vmatpush.msra.mxu1 %v142_v8  ;;  %v173_v38 = vld [vmem:[#allocation9] sm:$0xff] }
  0x22   :  { %196 = vmatpush.msra.mxu2 %v185_v22  ;;  %v230_v39 = vld [vmem:[%s433_s4] ss:$0 sm:$0xff] }
  0x23   :  { %158 = vmatpush.msra.mxu1 %v141_v9  ;;  %v231_v43 = vld [vmem:[%s435_s6] ss:$0 sm:$0xff] }
  0x24   :  { %197 = vmatpush.msra.mxu2 %v184_v23 }
  0x25   :  { %159 = vmatpush.msra.mxu1 %v140_v10 }
  0x26   :  { %198 = vmatpush.msra.mxu2 %v183_v24 }
  0x27   :  { %160 = vmatpush.msra.mxu1 %v139_v11 }
  0x28   :  { %199 = vmatpush.msra.mxu2 %v182_v25 }
  0x29   :  { %161 = vmatpush.msra.mxu1 %v138_v12 }
  0x2a   :  { %200 = vmatpush.msra.mxu2 %v181_v26 }
  0x2b   :  { %162 = vmatpush.msra.mxu1 %v137_v13 }
  0x2c   :  { %201 = vmatpush.msra.mxu2 %v180_v27 }
  0x2d   :  { %163 = vmatpush.msra.mxu1 %v136_v14 }
  0x2e   :  { %202 = vmatpush.msra.mxu2 %v179_v28 }
  0x2f   :  { %164 = vmatpush.msra.mxu1 %v135_v15 }
  0x30   :  { %203 = vmatpush.msra.mxu2 %v178_v29 }
  0x31   :  { %165 = vmatpush.msra.mxu1 %v134_v16 }
  0x32   :  { %204 = vmatpush.msra.mxu2 %v177_v30 }
  0x33   :  { %166 = vmatpush.msra.mxu1 %v133_v17 }
  0x34   :  { %205 = vmatpush.msra.mxu2 %v176_v31 }
  0x35   :  { %167 = vmatpush.msra.mxu1 %v132_v18 }
  0x36   :  { %206 = vmatpush.msra.mxu2 %v175_v36 }
  0x38   :  { %207 = vmatpush.msra.mxu2 %v174_v37 }
  0x3a   :  { %208 = vmatpush.msra.mxu2 %v173_v38 }
  0x96   :  { %v128_v33 = vpop.f32.mrf.mxu0 }
  0x97   :  { %v129_v34 = vadd.f32 %v229_v32, %v128_v33 }
  0x99   :  { %v131_v35 = vmax.f32 %v129_v34, 0.0 }
  0x9b   :  { %168 = vmatmul.f32.vlgmr.msra.gmra.mxu1 %v131_v35 }
 0x118   :  { %v169_v40 = vpop.f32.mrf.mxu1 }
 0x119   :  { %v170_v41 = vadd.f32 %v230_v39, %v169_v40 }
 0x11b   :  { %v172_v42 = vmax.f32 %v170_v41, 0.0 }
 0x11d   :  { %209 = vmatmul.f32.vlgmr.msra.gmra.mxu2 %v172_v42 }
 0x1a0   :  { %v210_v44 = vpop.f32.mrf.mxu2 }
 0x1a1   :  { %v211_v45 = vadd.f32 %v231_v43, %v210_v44 }
 0x1a3   :  { %213 = vst [vmem:[%s436_s7] sm:$0xff] %v211_v45 }
 0x1a4   :  { %218 = vsyncpa [#allocation3], 1 }
 0x1a5   :  { %219 = vsyncpa [#allocation5], 1 }
 0x1a6   :  { %220 = vsyncpa [#allocation8], 1 }

</bundles_post_ra>
